<compile_context>
chip_gen: v5e
topology: v5e:2x2
jax: 0.10.0
libtpu: 0.0.40
codegen_flags: <defaults>
</compile_context>

<pallas_src>
import functools

import jax
import jax.numpy as jnp
from jax import lax
from jax.experimental import pallas as pl
from jax.experimental.pallas import tpu as pltpu

EPS = 1e-5  # PyTorch nn.LayerNorm default eps


def _addnorm_kernel(seed_ref, x_ref, y_ref, gamma_ref, beta_ref, o_ref,
                    *, tile_rows, keep_threshold, dropout_scale,
                    apply_dropout):
    """One row-tile: out = LayerNorm(dropout(Y) + X) over the last axis."""
    x = x_ref[...].astype(jnp.float32)
    y = y_ref[...].astype(jnp.float32)

    if apply_dropout:
        # Stateless counter-based hash PRNG: hash(global element id, seed).
        # TODO(synk): PyTorch's exact dropout mask (torch RNG stream) is not
        # reproducible; semantics (keep prob 1-p, scale 1/(1-p)) are matched.
        shape = y.shape
        seed_u = seed_ref[0].astype(jnp.uint32)
        row0 = (pl.program_id(0) * tile_rows).astype(jnp.uint32)
        r = lax.broadcasted_iota(jnp.int32, shape, 0).astype(jnp.uint32)
        c = lax.broadcasted_iota(jnp.int32, shape, 1).astype(jnp.uint32)
        idx = (row0 + r) * jnp.uint32(shape[1]) + c
        h = idx * jnp.uint32(0x9E3779B9)
        h = h ^ (seed_u * jnp.uint32(0x85EBCA6B))
        h = h ^ (h >> jnp.uint32(16))
        h = h * jnp.uint32(0x7FEB352D)
        h = h ^ (h >> jnp.uint32(15))
        h = h * jnp.uint32(0x846CA68B)
        h = h ^ (h >> jnp.uint32(16))
        # keep with probability (1 - p): integer threshold compare, no float
        # conversion of the random bits needed.
        keep = h >= jnp.uint32(keep_threshold)
        y = jnp.where(keep, y * jnp.float32(dropout_scale), 0.0)

    z = x + y

    # One-pass statistics: var = E[z^2] - mean^2 (f32 accumulation; clamp for
    # the rare cancellation case).
    inv_h = jnp.float32(1.0 / z.shape[-1])
    mean = jnp.sum(z, axis=-1, keepdims=True) * inv_h
    mean_sq = jnp.sum(z * z, axis=-1, keepdims=True) * inv_h
    var = jnp.maximum(mean_sq - mean * mean, 0.0)
    inv = lax.rsqrt(var + EPS)

    gamma = gamma_ref[...].astype(jnp.float32)  # (1, H) broadcasts over rows
    beta = beta_ref[...].astype(jnp.float32)
    o_ref[...] = ((z - mean) * inv * gamma + beta).astype(o_ref.dtype)


def _pick_tile_rows(rows, H, itemsize):
    """Largest row tile fitting a conservative VMEM budget, dividing `rows`
    when possible (avoids padding + tail slice)."""
    # Per-row VMEM estimate: x, y, out double-buffered (+ ~4 f32 full-tile
    # intermediates inside the kernel).  Budget sized so it fits v5e's 16 MiB
    # scoped default headroom and v7x's 64 MiB physical VMEM comfortably.
    budget = 24 * 1024 * 1024
    per_row = H * (6 * itemsize + 4 * 4)
    cap = max(8, budget // per_row)
    cap = int(min(cap, 1024))

    if rows <= cap:
        return rows  # single block == full first dim -> always legal
    t = (cap // 8) * 8
    while t >= 8:
        if rows % t == 0:
            return t  # divides evenly -> no padding needed
        t -= 8
    return max(8, (cap // 8) * 8)  # fall back: pad the tail


def add_norm(x, y, gamma, beta, *, dropout_p=0.32, training=False, seed=0,
             tile_rows=None):
    """AddNorm forward. x, y: [B, S, H]; gamma, beta: [H]."""
    assert x.shape == y.shape
    B, S, H = x.shape
    rows = B * S
    x2 = x.reshape(rows, H)
    y2 = y.reshape(rows, H)

    itemsize = jnp.dtype(x.dtype).itemsize
    if tile_rows is None:
        tile_rows = _pick_tile_rows(rows, H, itemsize)

    padded_rows = pl.cdiv(rows, tile_rows) * tile_rows
    if padded_rows != rows:
        pad = padded_rows - rows
        x2 = jnp.pad(x2, ((0, pad), (0, 0)))
        y2 = jnp.pad(y2, ((0, pad), (0, 0)))

    gamma2 = gamma.reshape(1, H)
    beta2 = beta.reshape(1, H)
    seed_arr = jnp.array([seed], dtype=jnp.int32)

    apply_dropout = bool(training) and float(dropout_p) > 0.0
    p = float(dropout_p)
    keep_threshold = min(2**32 - 1, max(0, int(round(p * (2.0**32)))))
    dropout_scale = 1.0 / (1.0 - p) if apply_dropout else 1.0

    kernel = functools.partial(_addnorm_kernel,
                               tile_rows=tile_rows,
                               keep_threshold=keep_threshold,
                               dropout_scale=dropout_scale,
                               apply_dropout=apply_dropout)

    grid = (padded_rows // tile_rows,)
    out = pl.pallas_call(
        kernel,
        out_shape=jax.ShapeDtypeStruct((padded_rows, H), x.dtype),
        grid_spec=pltpu.PrefetchScalarGridSpec(
            num_scalar_prefetch=1,  # seed -> SMEM
            grid=grid,
            in_specs=[
                pl.BlockSpec((tile_rows, H), lambda i, seed: (i, 0)),  # X
                pl.BlockSpec((tile_rows, H), lambda i, seed: (i, 0)),  # Y
                pl.BlockSpec((1, H), lambda i, seed: (0, 0)),          # gamma
                pl.BlockSpec((1, H), lambda i, seed: (0, 0)),          # beta
            ],
            out_specs=pl.BlockSpec((tile_rows, H), lambda i, seed: (i, 0)),
        ),
        compiler_params=pltpu.CompilerParams(
            # Stateless per-element hash PRNG -> no cross-iteration state;
            # "parallel" lets v7x shard the grid across both TensorCores.
            dimension_semantics=("parallel",),
            vmem_limit_bytes=48 * 1024 * 1024,
        ),
    )(seed_arr, x2, y2, gamma2, beta2)

    if padded_rows != rows:
        out = out[:rows]
    return out.reshape(B, S, H)


def add_norm_reference(x, y, gamma, beta):
    """Pure-JAX eval-mode reference (dropout is identity in eval)."""
    z = y + x
    mean = jnp.mean(z, axis=-1, keepdims=True)
    var = jnp.mean((z - mean) ** 2, axis=-1, keepdims=True)
    return (z - mean) * lax.rsqrt(var + EPS) * gamma + beta


if __name__ == "__main__":
    B, S, H = 2, 8, 32
    dropout_p = 0.32

    key = jax.random.PRNGKey(0)
    kx, ky = jax.random.split(key)
    X = jax.random.normal(kx, (B, S, H), dtype=jnp.float32)
    Y = jax.random.normal(ky, (B, S, H), dtype=jnp.float32)

    # nn.LayerNorm default init: weight = 1, bias = 0 (deterministic).
    gamma = jnp.ones((H,), dtype=jnp.float32)
    beta = jnp.zeros((H,), dtype=jnp.float32)

    # Eval mode (dropout = identity): compare against reference.
    out_eval = add_norm(X, Y, gamma, beta, dropout_p=dropout_p, training=False)
    jax.block_until_ready(out_eval)
    ref = add_norm_reference(X, Y, gamma, beta)
    assert jnp.allclose(out_eval, ref, atol=2e-5, rtol=2e-5), "eval-mode mismatch"

    # Training mode (in-kernel stateless hash-PRNG dropout, deterministic seed).
    out_train = add_norm(X, Y, gamma, beta, dropout_p=dropout_p,
                         training=True, seed=1234)
    jax.block_until_ready(out_train)
    assert out_train.shape == (B, S, H)
    assert bool(jnp.all(jnp.isfinite(out_train)))

    print("KERNEL_OK")
</pallas_src>

<mosaic_0001>
module attributes {stable_mosaic.version = 11 : i64} {
  func.func @_addnorm_kernel(%arg0: i32, %arg1: memref<1xi32, #tpu.memory_space<smem>>, %arg2: memref<16x32xf32, #tpu.memory_space<vmem>>, %arg3: memref<16x32xf32, #tpu.memory_space<vmem>>, %arg4: memref<1x32xf32, #tpu.memory_space<vmem>>, %arg5: memref<1x32xf32, #tpu.memory_space<vmem>>, %arg6: memref<16x32xf32, #tpu.memory_space<vmem>>) attributes {dimension_semantics = [#tpu.dimension_semantics<parallel>], iteration_bounds = array<i64: 1>, scalar_prefetch = 1 : i64, scratch_operands = 0 : i64, tpu.core_type = #tpu.core_type<tc>, window_params = [{transform_indices = @transform_0, window_bounds = array<i64: 16, 32>}, {transform_indices = @transform_1, window_bounds = array<i64: 16, 32>}, {pipeline_mode = #tpu.pipeline_mode<synchronous>, transform_indices = @transform_2, window_bounds = array<i64: 1, 32>}, {pipeline_mode = #tpu.pipeline_mode<synchronous>, transform_indices = @transform_3, window_bounds = array<i64: 1, 32>}, {transform_indices = @transform_4, window_bounds = array<i64: 16, 32>}]} {
    %c0 = arith.constant 0 : index
    %c0_0 = arith.constant 0 : index
    %0 = vector.load %arg2[%c0, %c0_0] : memref<16x32xf32, #tpu.memory_space<vmem>>, vector<16x32xf32>
    %c0_1 = arith.constant 0 : index
    %c0_2 = arith.constant 0 : index
    %1 = vector.load %arg3[%c0_1, %c0_2] : memref<16x32xf32, #tpu.memory_space<vmem>>, vector<16x32xf32>
    %2 = arith.addf %0, %1 : vector<16x32xf32>
    %cst = arith.constant dense<0.000000e+00> : vector<16xf32>
    %3 = vector.multi_reduction <add>, %2, %cst [1] : vector<16x32xf32> to vector<16xf32>
    %4 = vector.shape_cast %3 : vector<16xf32> to vector<16x1xf32>
    %cst_3 = arith.constant 3.125000e-02 : f32
    %5 = vector.broadcast %cst_3 : f32 to vector<16x1xf32>
    %6 = arith.mulf %4, %5 : vector<16x1xf32>
    %7 = arith.mulf %2, %2 : vector<16x32xf32>
    %cst_4 = arith.constant dense<0.000000e+00> : vector<16xf32>
    %8 = vector.multi_reduction <add>, %7, %cst_4 [1] : vector<16x32xf32> to vector<16xf32>
    %9 = vector.shape_cast %8 : vector<16xf32> to vector<16x1xf32>
    %cst_5 = arith.constant 3.125000e-02 : f32
    %10 = vector.broadcast %cst_5 : f32 to vector<16x1xf32>
    %11 = arith.mulf %9, %10 : vector<16x1xf32>
    %12 = arith.mulf %6, %6 : vector<16x1xf32>
    %13 = arith.subf %11, %12 : vector<16x1xf32>
    %cst_6 = arith.constant 0.000000e+00 : f32
    %14 = vector.broadcast %cst_6 : f32 to vector<16x1xf32>
    %15 = arith.maximumf %13, %14 : vector<16x1xf32>
    %cst_7 = arith.constant 9.99999974E-6 : f32
    %16 = vector.broadcast %cst_7 : f32 to vector<16x1xf32>
    %17 = arith.addf %15, %16 : vector<16x1xf32>
    %18 = math.rsqrt %17 : vector<16x1xf32>
    %c0_8 = arith.constant 0 : index
    %c0_9 = arith.constant 0 : index
    %19 = vector.load %arg4[%c0_8, %c0_9] : memref<1x32xf32, #tpu.memory_space<vmem>>, vector<1x32xf32>
    %c0_10 = arith.constant 0 : index
    %c0_11 = arith.constant 0 : index
    %20 = vector.load %arg5[%c0_10, %c0_11] : memref<1x32xf32, #tpu.memory_space<vmem>>, vector<1x32xf32>
    %21 = vector.broadcast %6 : vector<16x1xf32> to vector<16x32xf32>
    %22 = arith.subf %2, %21 : vector<16x32xf32>
    %23 = vector.broadcast %18 : vector<16x1xf32> to vector<16x32xf32>
    %24 = arith.mulf %22, %23 : vector<16x32xf32>
    %25 = vector.broadcast %19 : vector<1x32xf32> to vector<16x32xf32>
    %26 = arith.mulf %24, %25 : vector<16x32xf32>
    %27 = vector.broadcast %20 : vector<1x32xf32> to vector<16x32xf32>
    %28 = arith.addf %26, %27 : vector<16x32xf32>
    %c0_12 = arith.constant 0 : index
    %c0_13 = arith.constant 0 : index
    %29 = vector.load %arg6[%c0_12, %c0_13] : memref<16x32xf32, #tpu.memory_space<vmem>>, vector<16x32xf32>
    tpu.vector_store %arg6[%c0_12, %c0_13], %28 {strides = array<i32>} : memref<16x32xf32, #tpu.memory_space<vmem>>, vector<16x32xf32>,
    return
  }
  func.func @transform_0(%arg0: i32, %arg1: memref<1xi32, #tpu.memory_space<smem>>) -> (i32, i32) {
    %c0_i32 = arith.constant 0 : i32
    %c0_i32_0 = arith.constant 0 : i32
    return %arg0, %c0_i32 : i32, i32
  }
  func.func @transform_1(%arg0: i32, %arg1: memref<1xi32, #tpu.memory_space<smem>>) -> (i32, i32) {
    %c0_i32 = arith.constant 0 : i32
    %c0_i32_0 = arith.constant 0 : i32
    return %arg0, %c0_i32 : i32, i32
  }
  func.func @transform_2(%arg0: i32, %arg1: memref<1xi32, #tpu.memory_space<smem>>) -> (i32, i32) {
    %c0_i32 = arith.constant 0 : i32
    %c0_i32_0 = arith.constant 0 : i32
    %c0_i32_1 = arith.constant 0 : i32
    return %c0_i32, %c0_i32_0 : i32, i32
  }
  func.func @transform_3(%arg0: i32, %arg1: memref<1xi32, #tpu.memory_space<smem>>) -> (i32, i32) {
    %c0_i32 = arith.constant 0 : i32
    %c0_i32_0 = arith.constant 0 : i32
    %c0_i32_1 = arith.constant 0 : i32
    return %c0_i32, %c0_i32_0 : i32, i32
  }
  func.func @transform_4(%arg0: i32, %arg1: memref<1xi32, #tpu.memory_space<smem>>) -> (i32, i32) {
    %c0_i32 = arith.constant 0 : i32
    %c0_i32_0 = arith.constant 0 : i32
    return %arg0, %c0_i32 : i32, i32
  }
}

</mosaic_0001>

<bundles_post_ra>
// kernel: tpu_custom_call.1
= control target key start
LH: loop header
LB: loop body
LE: loop exit
PB: predicated region body
PF: predicated region fallthrough
CT: control target
= control target key end

     0   :  { %11 = vsyncpa [#allocation5], 0  ;;  %s297_s0 = inlined_call_operand.<no memory space> [shape: s32[1], index: 0, kind: input, shape index: {}]   ;;  %s298_s1 = inlined_call_operand.hbm [shape: f32[16,32], index: 1, kind: input, shape index: {}]   ;;  %s299_s2 = inlined_call_operand.hbm [shape: f32[16,32], index: 2, kind: input, shape index: {}]   ;;  %s300_s3 = inlined_call_operand.vmem [shape: f32[1,32], index: 3, kind: input, shape index: {}]   ;;  %s301_s4 = inlined_call_operand.vmem [shape: f32[1,32], index: 4, kind: input, shape index: {}]   ;;  %s302_s5 = inlined_call_operand.hbm [shape: f32[16,32], index: 5, kind: output, shape index: {}]  }
   0x1   :  { %12 = vsyncpa [#allocation8], 0 }
   0x2   :  { %13 = vsyncpa [#allocation6], 0  ;;  %s18_s19 = sshll.u32 %s298_s1, 4  ;;  %s232_s20 = smov [#allocation4]   ;;  %s19_s19 = int_to_ptr.hbm [resolvable:$true] %s18_s19 }
   0x3   :  { %s20_s21 = sshll.u32 %s232_s20, 4  ;;  %s31_s24 = sshll.u32 %s299_s2, 4  ;;  %s21_s21 = int_to_ptr.vmem [resolvable:$true] %s20_s21  ;;  %s32_s24 = int_to_ptr.hbm [resolvable:$true] %s31_s24 }
   0x4   :  { %s233_s25 = smov 128   ;;  %s234_s26 = smov 8  }
   0x5   :  { %26 = dma.hbm_to_vmem [thread:$0]  %s19_s19, 256, %s21_s21, [#allocation5], %s233_s25, %s233_s25, %s234_s26  }
   0x6   :  { %s235_s27 = smov [#allocation7]  }
   0x7   :  { %s33_s28 = sshll.u32 %s235_s27, 4  ;;  %s34_s28 = int_to_ptr.vmem [resolvable:$true] %s33_s28 }
   0x8   :  { %39 = dma.hbm_to_vmem [thread:$0]  %s32_s24, 256, %s34_s28, [#allocation8], %s233_s25, %s233_s25, %s234_s26  }
   0x9   :  { %226 = dma.done.wait [#allocation5], 256  }
   0xa   :  { %227 = vsyncadd [#allocation5], 4294967040 }
   0xb   :  { %228 = dma.done.wait [#allocation8], 256  }
   0xc   :  { %229 = vsyncadd [#allocation8], 4294967040  ;;  %v52_v0 = vld [vmem:[#allocation4] sm:$0xff]  ;;  %v54_v1 = vld [vmem:[#allocation7] sm:$0xff]  ;;  %vm58_vm0 = vcmask 261120   ;;  %s129_s9 = sshll.u32 %s302_s5, 4  ;;  %s130_s9 = int_to_ptr.hbm [resolvable:$true] %s129_s9 }
   0xd   :  { %v53_v2 = vld [vmem:[#allocation4 + $0x8] sm:$0xff]  ;;  %v56_v3 = vadd.f32 %v54_v1, %v52_v0  ;;  %v55_v4 = vld [vmem:[#allocation7 + $0x8] sm:$0xff]  ;;  %v148_v37 = vld [vmem:[%s300_s3] ss:$0 sm:$0xff]  ;;  %s236_s3 = smov [#allocation9]  }
   0xe   :  { %v57_v7 = vadd.f32 %v55_v4, %v53_v2  ;;  %v149_v41 = vld [vmem:[%s301_s4] ss:$0 sm:$0xff]  ;;  %s127_s6 = sshll.u32 %s236_s3, 4  ;;  %s128_s6 = int_to_ptr.vmem [resolvable:$true] %s127_s6 }
   0xf   :  { %v59_v5 = vsel %vm58_vm0, %v56_v3, 0.0  ;;  %v67_v6 = vmul.f32 %v56_v3, %v56_v3 }
  0x10   :  { %60 = vadd.xlane.f32.xlu0 %v59_v5  ;;  %v68_v9 = vmul.f32 %v57_v7, %v57_v7  ;;  %v62_v10 = vsel %vm58_vm0, %v57_v7, 0.0 }
  0x11   :  { %v69_v8 = vsel %vm58_vm0, %v67_v6, 0.0 }
  0x12   :  { %70 = vadd.xlane.f32.xlu1 %v69_v8  ;;  %v72_v11 = vsel %vm58_vm0, %v68_v9, 0.0 }
  0x18   :  { %63 = vadd.xlane.f32.xlu0 %v62_v10 }
  0x1a   :  { %73 = vadd.xlane.f32.xlu1 %v72_v11 }
  0x83   :  { %v61_v12 = vpop.xlane.xlu0 %60 }
  0x84   :  { %v65_v13 = vmul.f32 0.03125, %v61_v12 }
  0x85   :  { %v71_v14 = vpop.xlane.xlu1 %70 }
  0x86   :  { %v77_v15 = vmul.f32 %v65_v13, %v65_v13  ;;  %v75_v16 = vmul.f32 0.03125, %v71_v14  ;;  %v107_v35 = vsub.f32 %v56_v3, %v65_v13 }
  0x88   :  { %v79_v17 = vsub.f32 %v75_v16, %v77_v15 }
  0x8a   :  { %v81_v18 = vmax.f32 %v79_v17, 0.0 }
  0x8b   :  { %v64_v19 = vpop.xlane.xlu0 %63 }
  0x8c   :  { %v83_v20 = vadd.f32 1e-05, %v81_v18  ;;  %v66_v21 = vmul.f32 0.03125, %v64_v19 }
  0x8d   :  { %v74_v22 = vpop.xlane.xlu1 %73 }
  0x8e   :  { %150 = vrsqrt.f32 %v83_v20  ;;  %v78_v23 = vmul.f32 %v66_v21, %v66_v21  ;;  %v76_v24 = vmul.f32 0.03125, %v74_v22  ;;  %vm91_vm2 = vweird.f32 %v83_v20 }
  0x8f   :  { %v108_v47 = vsub.f32 %v57_v7, %v66_v21 }
  0x90   :  { %v80_v25 = vsub.f32 %v76_v24, %v78_v23 }
  0x92   :  { %v82_v26 = vmax.f32 %v80_v25, 0.0 }
  0x94   :  { %v151_v27 = vpop.eup %150  ;;  %v84_v29 = vadd.f32 1e-05, %v82_v26 }
  0x95   :  { %v86_v28 = vmul.f32 %v151_v27, %v83_v20  ;;  %vm92_vm1 = vweird.f32 %v151_v27 }
  0x96   :  { %152 = vrsqrt.f32 %v84_v29  ;;  %vm93_vm3 = vmor %vm91_vm2, %vm92_vm1  ;;  %vm101_vm5 = vweird.f32 %v84_v29 }
  0x97   :  { %v87_v30 = vmul.f32 %v151_v27, %v86_v28 }
  0x99   :  { %v88_v31 = vmul.f32 0.5, %v87_v30 }
  0x9b   :  { %v89_v32 = vsub.f32 1.5, %v88_v31 }
  0x9c   :  { %v153_v33 = vpop.eup %152 }
  0x9d   :  { %v90_v34 = vmul.f32 %v151_v27, %v89_v32  ;;  %v96_v36 = vmul.f32 %v153_v33, %v84_v29  ;;  %vm102_vm4 = vweird.f32 %v153_v33 }
  0x9e   :  { %vm103_vm6 = vmor %vm101_vm5, %vm102_vm4 }
  0x9f   :  { %v94_v38 = vsel %vm93_vm3, %v151_v27, %v90_v34  ;;  %v97_v40 = vmul.f32 %v153_v33, %v96_v36 }
  0xa0   :  { %v109_v39 = vmul.f32 %v107_v35, %v94_v38 }
  0xa1   :  { %v98_v42 = vmul.f32 0.5, %v97_v40 }
  0xa2   :  { %v114_v43 = vmul.f32 %v148_v37, %v109_v39 }
  0xa3   :  { %v99_v44 = vsub.f32 1.5, %v98_v42 }
  0xa4   :  { %v119_v45 = vadd.f32 %v149_v41, %v114_v43 }
  0xa5   :  { %v100_v46 = vmul.f32 %v153_v33, %v99_v44 }
  0xa6   :  { %121 = vst.msk [vmem:[#allocation9] sm:$0xff] %vm58_vm0, %v119_v45 }
  0xa7   :  { %v104_v48 = vsel %vm103_vm6, %v153_v33, %v100_v46 }
  0xa8   :  { %v110_v49 = vmul.f32 %v108_v47, %v104_v48 }
  0xaa   :  { %v115_v50 = vmul.f32 %v148_v37, %v110_v49 }
  0xac   :  { %v120_v51 = vadd.f32 %v149_v41, %v115_v50 }
  0xae   :  { %122 = vst.msk [vmem:[#allocation9 + $0x8] sm:$0xff] %vm58_vm0, %v120_v51 }
  0xaf   :  { %135 = dma.vmem_to_hbm [thread:$0]  %s128_s6, 256, %s130_s9, [#allocation6], %s233_s25, %s233_s25, %s234_s26  }
  0xb0   :  { %230 = dma.done.wait [#allocation6], 256  }
  0xb1   :  { %231 = vsyncadd [#allocation6], 4294967040 }
  0xb2   :  { %140 = vsyncpa [#allocation5], 1 }
  0xb3   :  { %141 = vsyncpa [#allocation8], 1 }
  0xb4   :  { %142 = vsyncpa [#allocation6], 1 }

</bundles_post_ra>
